<compile_context>
chip_gen: v7x
topology: tpu7x:2x2x1
jax: 0.10.0
libtpu: 0.0.40
codegen_flags: <defaults>
</compile_context>

<pallas_src>
import functools

import jax
import jax.numpy as jnp
from jax import lax
from jax.experimental import pallas as pl
from jax.experimental.pallas import tpu as pltpu


def _gradmap_kernel(mask_ref, x_ref, o_ref, *, eps, H, W):
    """One grid step: TB flattened images laid out lane-dense as (TB, H*W)."""
    HW = H * W
    x = x_ref[...].astype(jnp.float32)            # (TB, HW)
    TB = x.shape[0]

    m_not_c0 = mask_ref[0:1, :]                   # (1, HW): 0.0 where col == 0
    m_not_cW = mask_ref[1:2, :]                   # (1, HW): 0.0 where col == W-1

    # Zero-pad each flattened image by one image-row (W zeros) on both sides,
    # entirely in VMEM. xp[:, k + W] == x[:, k].
    zrow = jnp.zeros((TB, W), jnp.float32)
    xp = jnp.concatenate([zrow, x, zrow], axis=1)            # (TB, HW + 2W)

    up    = xp[:, 0:HW]                                      # x[r-1, c] (0 at r==0)
    down  = xp[:, 2 * W:2 * W + HW]                          # x[r+1, c] (0 at r==H-1)
    left  = xp[:, W - 1:W - 1 + HW] * m_not_c0               # x[r, c-1] (0 at c==0)
    right = xp[:, W + 1:W + 1 + HW] * m_not_cW               # x[r, c+1] (0 at c==W-1)

    # CSE'd differences.
    rd = down - up        # x[r+1,c] - x[r-1,c]
    cd = right - left     # x[r,c+1] - x[r,c-1]

    # grad_v[r,c] = rd[r,c-1] + rd[r,c] + rd[r,c+1]  (kernel_v = [[-1,-1,-1],[0,0,0],[1,1,1]])
    rdp = jnp.concatenate([zrow, rd, zrow], axis=1)          # (TB, HW + 2W)
    gv = rd + rdp[:, W - 1:W - 1 + HW] * m_not_c0 \
            + rdp[:, W + 1:W + 1 + HW] * m_not_cW

    # grad_h[r,c] = cd[r-1,c] + cd[r,c] + cd[r+1,c]  (kernel_h = [[-1,0,1],[-1,0,1],[-1,0,1]])
    cdp = jnp.concatenate([zrow, cd, zrow], axis=1)          # (TB, HW + 2W)
    gh = cd + cdp[:, 0:HW] + cdp[:, 2 * W:2 * W + HW]

    o_ref[...] = jnp.sqrt(gv * gv + gh * gh + eps).astype(o_ref.dtype)


def _pick_block_rows(B, HW, target_bytes=1 << 20):
    """Rows (flattened images) per grid step: multiple of 8 that divides B, ~1 MiB tiles."""
    target = max(8, ((target_bytes // 4) // max(HW, 1)) // 8 * 8)
    if B >= 16:
        # Keep >= 2 grid steps so both TensorCores get work on v7x.
        target = min(target, max(8, ((B // 2) // 8) * 8))
    if B <= target:
        return B                     # single block == full dim (always a valid block)
    tb = (min(target, B) // 8) * 8
    while tb >= 8:
        if B % tb == 0:
            return tb
        tb -= 8
    return B                         # fallback: one block covering everything


def gradient_map(x, eps=1e-6):
    """x: (N, C, H, W) float array. Returns sqrt(grad_v^2 + grad_h^2 + eps)."""
    N, C, H, W = x.shape
    B, HW = N * C, H * W
    xf = x.reshape(B, HW)            # free reshape (contiguous layout unchanged)

    # Column-boundary masks (1.0 = "has that horizontal neighbor"), tiny (2, HW).
    col = jnp.arange(HW, dtype=jnp.int32) % W
    masks = jnp.stack([(col != 0), (col != W - 1)]).astype(jnp.float32)

    TB = _pick_block_rows(B, HW)
    grid = (pl.cdiv(B, TB),)

    out = pl.pallas_call(
        functools.partial(_gradmap_kernel, eps=eps, H=H, W=W),
        out_shape=jax.ShapeDtypeStruct((B, HW), x.dtype),
        grid=grid,
        in_specs=[
            pl.BlockSpec((2, HW), lambda i: (0, 0)),      # boundary masks (reused)
            pl.BlockSpec((TB, HW), lambda i: (i, 0)),     # lane-dense image block
        ],
        out_specs=pl.BlockSpec((TB, HW), lambda i: (i, 0)),
        compiler_params=pltpu.CompilerParams(
            dimension_semantics=("parallel",),
            vmem_limit_bytes=32 * 1024 * 1024,
        ),
    )(masks, xf)
    return out.reshape(N, C, H, W)


def _reference(x, eps=1e-6):
    """Pure-JAX reference using depthwise lax.conv (matches F.conv2d semantics)."""
    N, C, H, W = x.shape
    kv = jnp.array([[-1., -1., -1.], [0., 0., 0.], [1., 1., 1.]], jnp.float32)
    kh = jnp.array([[-1., 0., 1.], [-1., 0., 1.], [-1., 0., 1.]], jnp.float32)
    kv = jnp.tile(kv[None, None], (C, 1, 1, 1))  # (C, 1, 3, 3) OIHW, groups=C
    kh = jnp.tile(kh[None, None], (C, 1, 1, 1))
    dn = lax.conv_dimension_numbers(x.shape, kv.shape, ("NCHW", "OIHW", "NCHW"))
    gv = lax.conv_general_dilated(x, kv, (1, 1), ((1, 1), (1, 1)),
                                  dimension_numbers=dn, feature_group_count=C)
    gh = lax.conv_general_dilated(x, kh, (1, 1), ((1, 1), (1, 1)),
                                  dimension_numbers=dn, feature_group_count=C)
    return jnp.sqrt(gv ** 2 + gh ** 2 + eps)


if __name__ == "__main__":
    key = jax.random.PRNGKey(0)

    # Primary small test (matches the module's expected use).
    x = jax.random.normal(key, (2, 4, 16, 16), dtype=jnp.float32)
    out = jax.block_until_ready(gradient_map(x))
    ref = jax.block_until_ready(_reference(x))
    assert out.shape == ref.shape == (2, 4, 16, 16)
    assert jnp.allclose(out, ref, atol=1e-5, rtol=1e-5), float(jnp.max(jnp.abs(out - ref)))

    # Secondary check exercising the multi-step (batched-block) path.
    x2 = jax.random.normal(jax.random.PRNGKey(1), (2, 16, 32, 32), dtype=jnp.float32)
    out2 = jax.block_until_ready(gradient_map(x2))
    ref2 = jax.block_until_ready(_reference(x2))
    assert jnp.allclose(out2, ref2, atol=1e-5, rtol=1e-5), float(jnp.max(jnp.abs(out2 - ref2)))

    print("KERNEL_OK")
</pallas_src>

<mosaic_0001>
module attributes {stable_mosaic.version = 11 : i64} {
  func.func @_gradmap_kernel(%arg0: i32, %arg1: memref<2x256xf32, #tpu.memory_space<vmem>>, %arg2: memref<8x256xf32, #tpu.memory_space<vmem>>, %arg3: memref<8x256xf32, #tpu.memory_space<vmem>>) attributes {dimension_semantics = [#tpu.dimension_semantics<parallel>], iteration_bounds = array<i64: 1>, scalar_prefetch = 0 : i64, scratch_operands = 0 : i64, tpu.core_type = #tpu.core_type<tc>, window_params = [{pipeline_mode = #tpu.pipeline_mode<synchronous>, transform_indices = @transform_0, window_bounds = array<i64: 2, 256>}, {transform_indices = @transform_1, window_bounds = array<i64: 8, 256>}, {transform_indices = @transform_2, window_bounds = array<i64: 8, 256>}]} {
    %c0 = arith.constant 0 : index
    %c0_0 = arith.constant 0 : index
    %0 = vector.load %arg2[%c0, %c0_0] : memref<8x256xf32, #tpu.memory_space<vmem>>, vector<8x256xf32>
    %c0_1 = arith.constant 0 : index
    %c0_2 = arith.constant 0 : index
    %1 = vector.load %arg1[%c0_1, %c0_2] : memref<2x256xf32, #tpu.memory_space<vmem>>, vector<1x256xf32>
    %c1 = arith.constant 1 : index
    %c0_3 = arith.constant 0 : index
    %2 = vector.load %arg1[%c1, %c0_3] : memref<2x256xf32, #tpu.memory_space<vmem>>, vector<1x256xf32>
    %cst = arith.constant 0.000000e+00 : f32
    %3 = vector.broadcast %cst : f32 to vector<8x16xf32>
    %4 = tpu.concatenate %3, %0, %3 in 1 : vector<8x16xf32>, vector<8x256xf32>, vector<8x16xf32> -> vector<8x288xf32>
    %5 = vector.extract_strided_slice %4 {offsets = [0, 0], sizes = [8, 256], strides = [1, 1]} : vector<8x288xf32> to vector<8x256xf32>
    %6 = vector.extract_strided_slice %4 {offsets = [0, 32], sizes = [8, 256], strides = [1, 1]} : vector<8x288xf32> to vector<8x256xf32>
    %7 = vector.extract_strided_slice %4 {offsets = [0, 15], sizes = [8, 256], strides = [1, 1]} : vector<8x288xf32> to vector<8x256xf32>
    %8 = vector.broadcast %1 : vector<1x256xf32> to vector<8x256xf32>
    %9 = arith.mulf %7, %8 : vector<8x256xf32>
    %10 = vector.extract_strided_slice %4 {offsets = [0, 17], sizes = [8, 256], strides = [1, 1]} : vector<8x288xf32> to vector<8x256xf32>
    %11 = vector.broadcast %2 : vector<1x256xf32> to vector<8x256xf32>
    %12 = arith.mulf %10, %11 : vector<8x256xf32>
    %13 = arith.subf %6, %5 : vector<8x256xf32>
    %14 = arith.subf %12, %9 : vector<8x256xf32>
    %15 = tpu.concatenate %3, %13, %3 in 1 : vector<8x16xf32>, vector<8x256xf32>, vector<8x16xf32> -> vector<8x288xf32>
    %16 = vector.extract_strided_slice %15 {offsets = [0, 15], sizes = [8, 256], strides = [1, 1]} : vector<8x288xf32> to vector<8x256xf32>
    %17 = vector.broadcast %1 : vector<1x256xf32> to vector<8x256xf32>
    %18 = arith.mulf %16, %17 : vector<8x256xf32>
    %19 = arith.addf %13, %18 : vector<8x256xf32>
    %20 = vector.extract_strided_slice %15 {offsets = [0, 17], sizes = [8, 256], strides = [1, 1]} : vector<8x288xf32> to vector<8x256xf32>
    %21 = vector.broadcast %2 : vector<1x256xf32> to vector<8x256xf32>
    %22 = arith.mulf %20, %21 : vector<8x256xf32>
    %23 = arith.addf %19, %22 : vector<8x256xf32>
    %24 = tpu.concatenate %3, %14, %3 in 1 : vector<8x16xf32>, vector<8x256xf32>, vector<8x16xf32> -> vector<8x288xf32>
    %25 = vector.extract_strided_slice %24 {offsets = [0, 0], sizes = [8, 256], strides = [1, 1]} : vector<8x288xf32> to vector<8x256xf32>
    %26 = arith.addf %14, %25 : vector<8x256xf32>
    %27 = vector.extract_strided_slice %24 {offsets = [0, 32], sizes = [8, 256], strides = [1, 1]} : vector<8x288xf32> to vector<8x256xf32>
    %28 = arith.addf %26, %27 : vector<8x256xf32>
    %29 = arith.mulf %23, %23 : vector<8x256xf32>
    %30 = arith.mulf %28, %28 : vector<8x256xf32>
    %31 = arith.addf %29, %30 : vector<8x256xf32>
    %cst_4 = arith.constant 9.99999997E-7 : f32
    %32 = vector.broadcast %cst_4 : f32 to vector<8x256xf32>
    %33 = arith.addf %31, %32 : vector<8x256xf32>
    %34 = math.sqrt %33 : vector<8x256xf32>
    %c0_5 = arith.constant 0 : index
    %c0_6 = arith.constant 0 : index
    %35 = vector.load %arg3[%c0_5, %c0_6] : memref<8x256xf32, #tpu.memory_space<vmem>>, vector<8x256xf32>
    tpu.vector_store %arg3[%c0_5, %c0_6], %34 {strides = array<i32>} : memref<8x256xf32, #tpu.memory_space<vmem>>, vector<8x256xf32>,
    return
  }
  func.func @transform_0(%arg0: i32) -> (i32, i32) {
    %c0_i32 = arith.constant 0 : i32
    %c0_i32_0 = arith.constant 0 : i32
    %c0_i32_1 = arith.constant 0 : i32
    return %c0_i32, %c0_i32_0 : i32, i32
  }
  func.func @transform_1(%arg0: i32) -> (i32, i32) {
    %c0_i32 = arith.constant 0 : i32
    %c0_i32_0 = arith.constant 0 : i32
    return %arg0, %c0_i32 : i32, i32
  }
  func.func @transform_2(%arg0: i32) -> (i32, i32) {
    %c0_i32 = arith.constant 0 : i32
    %c0_i32_0 = arith.constant 0 : i32
    return %arg0, %c0_i32 : i32, i32
  }
}

</mosaic_0001>

<bundles_post_ra>
// kernel: tpu_custom_call.1
= control target key start
LH: loop header
LB: loop body
LE: loop exit
PB: predicated region body
PF: predicated region fallthrough
CT: control target
= control target key end

     0   :  { %7 = vsyncpa [#allocation3], 0  ;;  %s521_s0 = inlined_call_operand.hbm [shape: f32[2,256], index: 0, kind: input, shape index: {}]   ;;  %s522_s1 = inlined_call_operand.hbm [shape: f32[8,256], index: 1, kind: input, shape index: {}]   ;;  %s523_s2 = inlined_call_operand.hbm [shape: f32[8,256], index: 2, kind: output, shape index: {}]  }
   0x1   :  { %8 = vsyncpa [#allocation6], 0 }
   0x2   :  { %9 = vsyncpa [#allocation4], 0  ;;  %s397_s9 = smov [#allocation2]   ;;  %s398_s11 = smov [#allocation5]  }
   0x3   :  { %s16_s10 = sshll.u32 %s397_s9, 4  ;;  %s26_s12 = sshll.u32 %s398_s11, 4  ;;  %s17_s10 = int_to_ptr.vmem [resolvable:$true] %s16_s10  ;;  %s27_s12 = int_to_ptr.vmem [resolvable:$true] %s26_s12 }
   0x4   :  { %s325_s15 = scalar_lea.hbm %s521_s0, 64 }
   0x5   :  { %p326_p0 = scmp.ne.s32.totalorder %s521_s0, %s325_s15  ;;  %p329_p1 = scmp.lt.u32.totalorder %s325_s15, %s521_s0 }
   0x7   :  { %p331_p2 = pnand %p329_p1, %p326_p0 }
   0x9   :  { %334 = shalt.err (!%p331_p2)
}
   0xa   :  { %s335_s20 = scalar_lea.vmem %s17_s10, 64  ;;  %p340_p4 = scmp.lt.s32.totalorder %s17_s10, %s17_s10 }
   0xb   :  { %p336_p3 = scmp.ne.s32.totalorder %s17_s10, %s335_s20  ;;  %p341_p5 = scmp.lt.s32.totalorder %s335_s20, %s335_s20 }
   0xd   :  { %p342_p6 = por %p341_p5, %p340_p4 }
   0xf   :  { %p343_p7 = pnand %p342_p6, %p336_p3 }
  0x11   :  { %346 = shalt.err (!%p343_p7)
}
  0x12   :  { %19 = dma.hbm_to_vmem [thread:$0]  %s521_s0, 64, %s17_s10, [#allocation3]  }
  0x13   :  { %s347_s25 = scalar_lea.hbm %s522_s1, 256 }
  0x14   :  { %p348_p8 = scmp.ne.s32.totalorder %s522_s1, %s347_s25  ;;  %p351_p9 = scmp.lt.u32.totalorder %s347_s25, %s522_s1 }
  0x16   :  { %p353_p10 = pnand %p351_p9, %p348_p8 }
  0x18   :  { %356 = shalt.err (!%p353_p10)
}
  0x19   :  { %s357_s30 = scalar_lea.vmem %s27_s12, 256  ;;  %p362_p12 = scmp.lt.s32.totalorder %s27_s12, %s27_s12 }
  0x1a   :  { %p358_p11 = scmp.ne.s32.totalorder %s27_s12, %s357_s30  ;;  %p363_p13 = scmp.lt.s32.totalorder %s357_s30, %s357_s30 }
  0x1c   :  { %p364_p0 = por %p363_p13, %p362_p12 }
  0x1e   :  { %p365_p1 = pnand %p364_p0, %p358_p11 }
  0x20   :  { %368 = shalt.err (!%p365_p1)
}
  0x21   :  { %29 = dma.hbm_to_vmem [thread:$0]  %s522_s1, 256, %s27_s12, [#allocation6]  }
  0x22   :  { %391 = dma.done.wait [#allocation3], 64  }
  0x23   :  { %392 = vsyncadd [#allocation3], 4294967232 }
  0x24   :  { %393 = dma.done.wait [#allocation6], 256  }
  0x25   :  { %394 = vsyncadd [#allocation6], 4294967040  ;;  %v55_v0 = vlaneseq  ;;  %v36_v4 = vld [vmem:[#allocation5] sm:$0xff]  ;;  %v38_v5 = vld [vmem:[#allocation2] ss:$2 sm:$0x3] }
  0x26   :  { %s399_s4 = smov 16   ;;  %v37_v7 = vld [vmem:[#allocation5 + $0x8] sm:$0xff]  ;;  %v40_v8 = vld [vmem:[#allocation2 + $0x1] ss:$2 sm:$0x3]  ;;  %s400_s5 = smov 15  }
  0x27   :  { %v56_v1 = vshrl.u32 %v55_v0, 7  ;;  %43 = vrot.lane.b32.xlu0 %v36_v4, %s399_s4  ;;  %s401_s1 = smov 17   ;;  %vm47_vm0 = vcmask 130048   ;;  %vm67_vm1 = vcmask 121856   ;;  %s402_s6 = smov 2   ;;  %vm88_vm2 = vcmask 138240  }
  0x28   :  { %s403_s7 = smov 32   ;;  %s404_s8 = smov 127   ;;  %vm118_vm3 = vcmask 15360   ;;  %vm101_vm4 = vcmask 261120   ;;  %vm193_vm5 = vcmask 1039360   ;;  %vm136_vm6 = vcmask 916480  }
  0x29   :  { %v57_v2 = vsub.s32 0, %v56_v1  ;;  %v61_v3 = vsub.s32 1, %v56_v1  ;;  %s405_s9 = smov 112   ;;  %s406_s10 = smov 113   ;;  %vm219_vm7 = vcmask 924672   ;;  %vm284_vm14 = vcmask 785408  }
  0x2a   :  { %s407_s11 = smov 96   ;;  %s408_s12 = smov [#allocation7]  }
  0x2b   :  { %v58_v6 = vrot.slane %v38_v5, %v57_v2  ;;  %v62_v9 = vrot.slane %v38_v5, %v61_v3  ;;  %45 = vrot.lane.b32.xlu0 %v37_v7, %s399_s4  ;;  %v79_v10 = vrot.slane %v40_v8, %v57_v2  ;;  %v83_v11 = vrot.slane %v40_v8, %v61_v3  ;;  %s297_s13 = sshll.u32 %s408_s12, 4  ;;  %s298_s13 = int_to_ptr.vmem [resolvable:$true] %s297_s13 }
  0x2c   :  { %s369_s14 = scalar_lea.vmem %s298_s13, 256  ;;  %p374_p3 = scmp.lt.s32.totalorder %s298_s13, %s298_s13 }
  0x2d   :  { %63 = vrot.lane.b32.xlu1 %v58_v6, %s400_s5  ;;  %p370_p2 = scmp.ne.s32.totalorder %s298_s13, %s369_s14  ;;  %p375_p4 = scmp.lt.s32.totalorder %s369_s14, %s369_s14 }
  0x2f   :  { %84 = vrot.lane.b32.xlu0 %v79_v10, %s401_s1  ;;  %p376_p5 = por %p375_p4, %p374_p3 }
  0x31   :  { %65 = vrot.lane.b32.xlu1 %v62_v9, %s400_s5  ;;  %p377_p6 = pnand %p376_p5, %p370_p2 }
  0x35   :  { %86 = vrot.lane.b32.xlu1 %v83_v11, %s401_s1 }
  0x99   :  { %v44_v12 = vpop.permute.xlu0 %43 }
  0x9a   :  { %v52_v13 = vsel %vm47_vm0, 0.0, %v44_v12 }
  0x9d   :  { %v46_v16 = vpop.permute.xlu0 %45 }
  0x9e   :  { %v53_v17 = vsel %vm47_vm0, %v46_v16, 0.0  ;;  %v48_v19 = vsel %vm47_vm0, %v44_v12, %v46_v16 }
  0x9f   :  { %v453_v14 = vpop.permute.xlu1 %63 }
  0xa0   :  { %v72_v15 = vmul.f32 %v453_v14, %v52_v13 }
  0xa1   :  { %v85_v23 = vpop.permute.xlu0 %84 }
  0xa2   :  { %112 = vrot.lane.b32.xlu0 %v72_v15, %s402_s6  ;;  %v93_v24 = vmul.f32 %v85_v23, %v52_v13 }
  0xa3   :  { %v457_v18 = vpop.permute.xlu1 %65 }
  0xa4   :  { %v463_v20 = vsel %vm67_vm1, %v453_v14, %v457_v18  ;;  %v74_v21 = vmul.f32 %v457_v18, %v53_v17 }
  0xa5   :  { %v73_v22 = vmul.f32 %v463_v20, %v48_v19 }
  0xa6   :  { %116 = vrot.lane.b32.xlu0 %v74_v21, %s402_s6 }
  0xa7   :  { %114 = vrot.lane.b32.xlu1 %v73_v22, %s402_s6  ;;  %v87_v25 = vpop.permute.xlu1 %86 }
  0xa8   :  { %v89_v28 = vsel %vm88_vm2, %v85_v23, %v87_v25  ;;  %v95_v31 = vmul.f32 %v87_v25, %v53_v17 }
  0xa9   :  { %v94_v30 = vmul.f32 %v89_v28, %v48_v19 }
  0xaa   :  { %99 = vrot.lane.b32.xlu0 %v48_v19, %s403_s7 }
  0xab   :  { %97 = vrot.lane.b32.xlu1 %v52_v13, %s403_s7 }
 0x114   :  { %v113_v26 = vpop.permute.xlu0 %112 }
 0x115   :  { %v467_v27 = vsub.f32 %v93_v24, %v113_v26 }
 0x117   :  { %187 = vrot.lane.b32.xlu1 %v467_v27, %s404_s8 }
 0x118   :  { %v117_v29 = vpop.permute.xlu0 %116 }
 0x119   :  { %v115_v32 = vpop.permute.xlu1 %114 }
 0x11a   :  { %v119_v33 = vsel %vm118_vm3, %v113_v26, %v115_v32  ;;  %v120_v34 = vsel %vm118_vm3, %v115_v32, %v117_v29 }
 0x11b   :  { %v125_v35 = vsub.f32 %v94_v30, %v119_v33  ;;  %v126_v36 = vsub.f32 %v95_v31, %v120_v34 }
 0x11c   :  { %v100_v37 = vpop.permute.xlu0 %99 }
 0x11d   :  { %v98_v38 = vpop.permute.xlu1 %97  ;;  %189 = vrot.lane.b32.xlu0 %v125_v35, %s404_s8  ;;  %191 = vrot.lane.b32.xlu1 %v126_v36, %s404_s8  ;;  %v477_v42 = vsub.f32 %v53_v17, %v100_v37 }
 0x11e   :  { %v102_v39 = vsel %vm101_vm4, %v98_v38, %v100_v37  ;;  %v471_v40 = vsub.f32 %v52_v13, %v98_v38 }
 0x11f   :  { %v473_v41 = vsub.f32 %v48_v19, %v102_v39 }
 0x121   :  { %130 = vrot.lane.b32.xlu0 %v471_v40, %s405_s9  ;;  %132 = vrot.lane.b32.xlu1 %v473_v41, %s405_s9 }
 0x125   :  { %134 = vrot.lane.b32.xlu0 %v477_v42, %s405_s9 }
 0x189   :  { %v188_v43 = vpop.permute.xlu1 %187 }
 0x18f   :  { %v192_v44 = vpop.permute.xlu1 %191  ;;  %v190_v45 = vpop.permute.xlu0 %189 }
 0x190   :  { %v194_v46 = vsel %vm193_vm5, %v188_v43, %v190_v45  ;;  %v195_v47 = vsel %vm193_vm5, %v190_v45, %v192_v44  ;;  %v199_v57 = vsel %vm47_vm0, %v192_v44, 0.0 }
 0x191   :  { %203 = vrot.lane.b32.xlu0 %v195_v47, %s401_s1  ;;  %v198_v48 = vsel %vm47_vm0, 0.0, %v194_v46 }
 0x192   :  { %201 = vrot.lane.b32.xlu1 %v198_v48, %s401_s1 }
 0x193   :  { %v133_v49 = vpop.permute.xlu1 %132  ;;  %v131_v50 = vpop.permute.xlu0 %130 }
 0x194   :  { %v137_v51 = vsel %vm136_vm6, %v131_v50, %v133_v49 }
 0x195   :  { %v142_v52 = vsel %vm47_vm0, 0.0, %v137_v51  ;;  %215 = vrot.lane.b32.xlu0 %v195_v47, %s406_s10 }
 0x196   :  { %v144_v53 = vmul.f32 %v142_v52, %v453_v14  ;;  %213 = vrot.lane.b32.xlu1 %v198_v48, %s406_s10  ;;  %v164_v61 = vmul.f32 %v142_v52, %v85_v23 }
 0x197   :  { %v135_v54 = vpop.permute.xlu0 %134 }
 0x198   :  { %v143_v55 = vsel %vm47_vm0, %v135_v54, 0.0  ;;  %v138_v56 = vsel %vm136_vm6, %v133_v49, %v135_v54 }
 0x199   :  { %150 = vrot.lane.b32.xlu0 %v144_v53, %s401_s1  ;;  %v146_v58 = vmul.f32 %v143_v55, %v457_v18  ;;  %v145_v59 = vmul.f32 %v138_v56, %v463_v20  ;;  %v165_v60 = vmul.f32 %v138_v56, %v89_v28  ;;  %v166_v62 = vmul.f32 %v143_v55, %v87_v25 }
 0x19a   :  { %217 = vrot.lane.b32.xlu1 %v199_v57, %s406_s10 }
 0x19d   :  { %154 = vrot.lane.b32.xlu0 %v146_v58, %s401_s1 }
 0x19e   :  { %152 = vrot.lane.b32.xlu1 %v145_v59, %s401_s1 }
 0x1a1   :  { %172 = vrot.lane.b32.xlu0 %v165_v60, %s400_s5 }
 0x1a2   :  { %170 = vrot.lane.b32.xlu1 %v164_v61, %s400_s5 }
 0x1a6   :  { %174 = vrot.lane.b32.xlu1 %v166_v62, %s400_s5 }
 0x203   :  { %v204_v63 = vpop.permute.xlu0 %203 }
 0x204   :  { %v202_v0 = vpop.permute.xlu1 %201  ;;  %v211_v7 = vadd.f32 %v204_v63, %v126_v36 }
 0x205   :  { %v209_v2 = vadd.f32 %v202_v0, %v467_v27  ;;  %v205_v4 = vsel %vm88_vm2, %v202_v0, %v204_v63 }
 0x206   :  { %v210_v8 = vadd.f32 %v205_v4, %v125_v35 }
 0x207   :  { %v216_v1 = vpop.permute.xlu0 %215 }
 0x208   :  { %v214_v3 = vpop.permute.xlu1 %213 }
 0x209   :  { %v220_v5 = vsel %vm219_vm7, %v214_v3, %v216_v1 }
 0x20a   :  { %v225_v6 = vadd.f32 %v220_v5, %v209_v2 }
 0x20b   :  { %v151_v16 = vpop.permute.xlu0 %150 }
 0x20c   :  { %v231_v9 = vmul.f32 %v225_v6, %v225_v6  ;;  %v218_v10 = vpop.permute.xlu1 %217  ;;  %v161_v20 = vadd.f32 %v151_v16, %v471_v40 }
 0x20d   :  { %v221_v11 = vsel %vm219_vm7, %v216_v1, %v218_v10  ;;  %v227_v12 = vadd.f32 %v218_v10, %v211_v7 }
 0x20e   :  { %v226_v13 = vadd.f32 %v221_v11, %v210_v8  ;;  %237 = vrot.lane.b32.xlu0 %v231_v9, %s400_s5 }
 0x20f   :  { %v233_v14 = vmul.f32 %v227_v12, %v227_v12  ;;  %v155_v18 = vpop.permute.xlu0 %154 }
 0x210   :  { %v232_v15 = vmul.f32 %v226_v13, %v226_v13  ;;  %v153_v17 = vpop.permute.xlu1 %152 }
 0x211   :  { %v156_v23 = vsel %vm88_vm2, %v151_v16, %v153_v17  ;;  %v157_v24 = vsel %vm88_vm2, %v153_v17, %v155_v18 }
 0x212   :  { %239 = vrot.lane.b32.xlu1 %v232_v15, %s400_s5  ;;  %241 = vrot.lane.b32.xlu0 %v233_v14, %s400_s5  ;;  %v162_v28 = vadd.f32 %v156_v23, %v473_v41  ;;  %v163_v29 = vadd.f32 %v157_v24, %v477_v42 }
 0x213   :  { %v173_v21 = vpop.permute.xlu0 %172 }
 0x214   :  { %v171_v19 = vpop.permute.xlu1 %170 }
 0x215   :  { %v181_v25 = vadd.f32 %v171_v19, %v161_v20  ;;  %v176_v26 = vsel %vm67_vm1, %v171_v19, %v173_v21 }
 0x216   :  { %v182_v31 = vadd.f32 %v176_v26, %v162_v28 }
 0x217   :  { %v228_v30 = vmul.f32 %v181_v25, %v181_v25 }
 0x218   :  { %v175_v22 = vpop.permute.xlu1 %174  ;;  %v229_v36 = vmul.f32 %v182_v31, %v182_v31 }
 0x219   :  { %v177_v27 = vsel %vm67_vm1, %v173_v21, %v175_v22 }
 0x21a   :  { %v183_v32 = vadd.f32 %v177_v27, %v163_v29 }
 0x21c   :  { %v230_v37 = vmul.f32 %v183_v32, %v183_v32 }
 0x280   :  { %v238_v33 = vpop.permute.xlu0 %237 }
 0x281   :  { %v248_v34 = vadd.f32 %v238_v33, %v228_v30 }
 0x283   :  { %v251_v35 = vadd.f32 1e-06, %v248_v34 }
 0x284   :  { %v240_v38 = vpop.permute.xlu1 %239  ;;  %v242_v39 = vpop.permute.xlu0 %241 }
 0x285   :  { %v243_v40 = vsel %vm67_vm1, %v238_v33, %v240_v38  ;;  %v244_v43 = vsel %vm67_vm1, %v240_v38, %v242_v39  ;;  %319 = vrsqrt.f32 %v251_v35  ;;  %vm256_vm8 = vcmp.eq.f32.partialorder %v251_v35, inf }
 0x286   :  { %v249_v44 = vadd.f32 %v243_v40, %v229_v36  ;;  %v250_v45 = vadd.f32 %v244_v43, %v230_v37  ;;  %v259_v48 = vand.u32 2147483648, %v251_v35  ;;  %vm258_vm9 = vcmp.eq.f32.partialorder %v251_v35, 0.0 }
 0x288   :  { %v252_v41 = vadd.f32 1e-06, %v249_v44  ;;  %v253_v46 = vadd.f32 1e-06, %v250_v45 }
 0x28a   :  { %321 = vrsqrt.f32 %v252_v41  ;;  %vm263_vm10 = vcmp.eq.f32.partialorder %v252_v41, inf  ;;  %v266_v54 = vand.u32 2147483648, %v252_v41  ;;  %vm265_vm11 = vcmp.eq.f32.partialorder %v252_v41, 0.0 }
 0x28b   :  { %323 = vrsqrt.f32 %v253_v46  ;;  %vm270_vm12 = vcmp.eq.f32.partialorder %v253_v46, inf  ;;  %v273_v57 = vand.u32 2147483648, %v253_v46  ;;  %vm272_vm13 = vcmp.eq.f32.partialorder %v253_v46, 0.0 }
 0x28f   :  { %v320_v42 = vpop.eup %319 }
 0x290   :  { %v255_v47 = vmul.f32 %v320_v42, %v251_v35 }
 0x292   :  { %v257_v49 = vsel %vm256_vm8, %v251_v35, %v255_v47 }
 0x293   :  { %v260_v50 = vsel %vm258_vm9, %v259_v48, %v257_v49 }
 0x294   :  { %v322_v51 = vpop.eup %321  ;;  %278 = vrot.lane.b32.xlu1 %v260_v50, %s407_s11 }
 0x295   :  { %v324_v52 = vpop.eup %323  ;;  %v262_v53 = vmul.f32 %v322_v51, %v252_v41 }
 0x296   :  { %v269_v55 = vmul.f32 %v324_v52, %v253_v46 }
 0x297   :  { %v264_v56 = vsel %vm263_vm10, %v252_v41, %v262_v53 }
 0x298   :  { %v267_v58 = vsel %vm265_vm11, %v266_v54, %v264_v56  ;;  %v271_v59 = vsel %vm270_vm12, %v253_v46, %v269_v55 }
 0x299   :  { %280 = vrot.lane.b32.xlu0 %v267_v58, %s407_s11  ;;  %v274_v60 = vsel %vm272_vm13, %v273_v57, %v271_v59 }
 0x29a   :  { %282 = vrot.lane.b32.xlu1 %v274_v60, %s407_s11 }
 0x306   :  { %v279_v61 = vpop.permute.xlu1 %278 }
 0x30b   :  { %v281_v62 = vpop.permute.xlu0 %280 }
 0x30c   :  { %v283_v63 = vpop.permute.xlu1 %282  ;;  %v285_v0 = vsel %vm284_vm14, %v279_v61, %v281_v62 }
 0x30d   :  { %v286_v1 = vsel %vm284_vm14, %v281_v62, %v283_v63  ;;  %289 = vst [vmem:[#allocation7] sm:$0xff] %v285_v0 }
 0x30e   :  { %290 = vst [vmem:[#allocation7 + $0x8] sm:$0xff] %v286_v1 }
 0x30f   :  { %380 = shalt.err (!%p377_p6)
}
 0x310   :  { %s381_s17 = scalar_lea.hbm %s523_s2, 256 }
 0x311   :  { %p382_p7 = scmp.ne.s32.totalorder %s523_s2, %s381_s17  ;;  %p385_p8 = scmp.lt.u32.totalorder %s381_s17, %s523_s2 }
 0x313   :  { %p387_p9 = pnand %p385_p8, %p382_p7 }
 0x315   :  { %390 = shalt.err (!%p387_p9)
}
 0x316   :  { %300 = dma.vmem_to_hbm [thread:$0]  %s298_s13, 256, %s523_s2, [#allocation4]  }
 0x317   :  { %395 = dma.done.wait [#allocation4], 256  }
 0x318   :  { %396 = vsyncadd [#allocation4], 4294967040 }
 0x319   :  { %304 = vsyncpa [#allocation3], 1 }
 0x31a   :  { %305 = vsyncpa [#allocation6], 1 }
 0x31b   :  { %306 = vsyncpa [#allocation4], 1 }

</bundles_post_ra>
